<compile_context>
chip_gen: v5e
topology: v5e:2x2
jax: 0.10.0
libtpu: 0.0.40
codegen_flags: <defaults>
</compile_context>

<pallas_src>
import functools

import jax
import jax.numpy as jnp
from jax.experimental import pallas as pl
from jax.experimental.pallas import tpu as pltpu

GAMMA = 1.5
ALPHA = 0.25
NCORES = 2          # leading parallel grid axis (exploits v7x's 2 TCs)
MAX_TILE_ROWS = 256 # 256 x 1024 f32 = 1 MiB per input block
WIDE_LANES = 1024   # lane-dense slab width for large inputs


def _focal_kernel(pred_ref, true_ref, out_ref, acc_ref, *, gamma, alpha):
    i = pl.program_id(1)

    @pl.when(i == 0)
    def _():
        acc_ref[...] = jnp.zeros_like(acc_ref)

    x = pred_ref[...].astype(jnp.float32)   # logits
    z = true_ref[...].astype(jnp.float32)   # targets

    # Numerically stable BCE-with-logits (reduction='none'):
    #   max(x,0) - x*z + log(1 + exp(-|x|))
    e = jnp.exp(-jnp.abs(x))                # shared with sigmoid below
    bce = jnp.maximum(x, 0.0) - x * z + jnp.log1p(e)

    # sigmoid(x) reusing e = exp(-|x|):
    #   x >= 0: 1/(1+e)      x < 0: e/(1+e)
    p = jnp.where(x >= 0.0, 1.0, e) / (1.0 + e)

    p_t = z * p + (1.0 - z) * (1.0 - p)
    alpha_factor = z * alpha + (1.0 - z) * (1.0 - alpha)

    t = jnp.maximum(1.0 - p_t, 0.0)         # clamp guards soft labels
    if gamma == 1.5:
        modulating_factor = t * jnp.sqrt(t)  # 1 EUP op instead of pow's log+exp
    elif gamma == 2.0:
        modulating_factor = t * t
    elif gamma == 1.0:
        modulating_factor = t
    else:
        modulating_factor = jnp.power(t, gamma)

    # Elementwise accumulate (VPU only); single XLU reduction at the end.
    acc_ref[...] += bce * alpha_factor * modulating_factor

    @pl.when(i == pl.num_programs(1) - 1)
    def _():
        out_ref[...] = jnp.reshape(jnp.sum(acc_ref[...]), (1, 1, 1))


def focal_loss(pred, true, gamma=GAMMA, alpha=ALPHA, reduction="mean",
               ncores=NCORES):
    """Focal loss over BCE-with-logits. pred/true: same shape (logits, targets)."""
    assert pred.shape == true.shape
    n = pred.size

    # Slab geometry: wide lane-dense slab for big inputs, compact for small ones.
    lane = WIDE_LANES if n >= WIDE_LANES * 8 * ncores else 128
    rows_needed = pl.cdiv(n, lane)
    rows_per_core = pl.cdiv(rows_needed, ncores)
    tile_r = min(MAX_TILE_ROWS, ((rows_per_core + 7) // 8) * 8)
    nb = pl.cdiv(rows_per_core, tile_r)          # row-blocks per core
    total_rows = ncores * nb * tile_r
    padded = total_rows * lane
    pad = padded - n

    flat_pred = pred.reshape(-1)
    flat_true = true.reshape(-1)
    if pad:
        # Pad logits with a large negative value and targets with 0 so padded
        # elements contribute ~0 loss -> no mask stream needed.
        flat_pred = jnp.pad(flat_pred, (0, pad), constant_values=-30.0)
        flat_true = jnp.pad(flat_true, (0, pad))
    pred2d = flat_pred.reshape(total_rows, lane)
    true2d = flat_true.reshape(total_rows, lane)

    kernel = functools.partial(_focal_kernel, gamma=gamma, alpha=alpha)
    tile_spec = pl.BlockSpec((tile_r, lane), lambda c, i: (c * nb + i, 0))

    partials = pl.pallas_call(
        kernel,
        out_shape=jax.ShapeDtypeStruct((ncores, 1, 1), jnp.float32),
        grid_spec=pltpu.PrefetchScalarGridSpec(
            num_scalar_prefetch=0,
            grid=(ncores, nb),
            in_specs=[tile_spec, tile_spec],
            out_specs=pl.BlockSpec((1, 1, 1), lambda c, i: (c, 0, 0)),
            scratch_shapes=[pltpu.VMEM((tile_r, lane), jnp.float32)],
        ),
        compiler_params=pltpu.CompilerParams(
            dimension_semantics=("parallel", "arbitrary"),
            vmem_limit_bytes=32 * 1024 * 1024),
    )(pred2d, true2d)

    total = jnp.sum(partials)
    if reduction == "sum":
        return total
    # TODO(synk): reduction='none' (full elementwise output) not implemented;
    # default BCEWithLogitsLoss uses 'mean'.
    return total / jnp.float32(n)


def focal_loss_ref(pred, true, gamma=GAMMA, alpha=ALPHA):
    """Pure-JAX reference (mirrors the PyTorch module with BCEWithLogitsLoss)."""
    x = pred.astype(jnp.float32)
    z = true.astype(jnp.float32)
    bce = jnp.maximum(x, 0.0) - x * z + jnp.log1p(jnp.exp(-jnp.abs(x)))
    p = jax.nn.sigmoid(x)
    p_t = z * p + (1 - z) * (1 - p)
    alpha_factor = z * alpha + (1 - z) * (1 - alpha)
    modulating_factor = (1.0 - p_t) ** gamma
    loss = bce * alpha_factor * modulating_factor
    return loss.mean()


if __name__ == "__main__":
    key = jax.random.PRNGKey(0)
    k1, k2 = jax.random.split(key)
    # NCHW, small shapes
    pred = jax.random.normal(k1, (2, 4, 16, 16), jnp.float32)
    true = (jax.random.uniform(k2, (2, 4, 16, 16)) > 0.5).astype(jnp.float32)

    out = focal_loss(pred, true)
    out = jax.block_until_ready(out)

    ref = focal_loss_ref(pred, true)
    assert jnp.allclose(out, ref, rtol=1e-5, atol=1e-6), (out, ref)
    print("KERNEL_OK")
</pallas_src>

<mosaic_0001>
module attributes {stable_mosaic.version = 11 : i64} {
  func.func @_focal_kernel(%arg0: i32, %arg1: i32, %arg2: memref<8x128xf32, #tpu.memory_space<vmem>>, %arg3: memref<8x128xf32, #tpu.memory_space<vmem>>, %arg4: memref<1x1x1xf32, #tpu.memory_space<vmem>>, %arg5: memref<8x128xf32, #tpu.memory_space<vmem>>) attributes {dimension_semantics = [#tpu.dimension_semantics<parallel>, #tpu.dimension_semantics<arbitrary>], iteration_bounds = array<i64: 2, 1>, scalar_prefetch = 0 : i64, scratch_operands = 1 : i64, tpu.core_type = #tpu.core_type<tc>, window_params = [{transform_indices = @transform_0, window_bounds = array<i64: 8, 128>}, {transform_indices = @transform_1, window_bounds = array<i64: 8, 128>}, {transform_indices = @transform_2, window_bounds = array<i64: 1, 1, 1>}]} {
    %c0_i32 = arith.constant 0 : i32
    %0 = arith.cmpi eq, %arg1, %c0_i32 : i32
    %1 = arith.extui %0 : i1 to i32
    %c0_i32_0 = arith.constant 0 : i32
    %2 = arith.cmpi ne, %1, %c0_i32_0 : i32
    scf.if %2 {
      %cst_21 = arith.constant 0.000000e+00 : f32
      %50 = vector.broadcast %cst_21 : f32 to vector<8x128xf32>
      %c0_22 = arith.constant 0 : index
      %c0_23 = arith.constant 0 : index
      %51 = vector.load %arg5[%c0_22, %c0_23] : memref<8x128xf32, #tpu.memory_space<vmem>>, vector<8x128xf32>
      tpu.vector_store %arg5[%c0_22, %c0_23], %50 {strides = array<i32>} : memref<8x128xf32, #tpu.memory_space<vmem>>, vector<8x128xf32>,
    } else {
    }
    %c0 = arith.constant 0 : index
    %c0_1 = arith.constant 0 : index
    %3 = vector.load %arg2[%c0, %c0_1] : memref<8x128xf32, #tpu.memory_space<vmem>>, vector<8x128xf32>
    %c0_2 = arith.constant 0 : index
    %c0_3 = arith.constant 0 : index
    %4 = vector.load %arg3[%c0_2, %c0_3] : memref<8x128xf32, #tpu.memory_space<vmem>>, vector<8x128xf32>
    %5 = math.absf %3 : vector<8x128xf32>
    %cst = arith.constant 0.000000e+00 : f32
    %6 = vector.broadcast %cst : f32 to vector<8x128xf32>
    %7 = arith.subf %6, %5 : vector<8x128xf32>
    %8 = math.exp %7 : vector<8x128xf32>
    %cst_4 = arith.constant 0.000000e+00 : f32
    %9 = vector.broadcast %cst_4 : f32 to vector<8x128xf32>
    %10 = arith.maximumf %3, %9 : vector<8x128xf32>
    %11 = arith.mulf %3, %4 : vector<8x128xf32>
    %12 = arith.subf %10, %11 : vector<8x128xf32>
    %13 = math.log1p %8 : vector<8x128xf32>
    %14 = arith.addf %12, %13 : vector<8x128xf32>
    %cst_5 = arith.constant 0.000000e+00 : f32
    %15 = vector.broadcast %cst_5 : f32 to vector<8x128xf32>
    %16 = arith.cmpf oge, %3, %15 : vector<8x128xf32>
    %cst_6 = arith.constant 1.000000e+00 : f32
    %17 = vector.broadcast %cst_6 : f32 to vector<8x128xf32>
    %18 = arith.select %16, %17, %8 : vector<8x128xi1>, vector<8x128xf32>
    %cst_7 = arith.constant 1.000000e+00 : f32
    %19 = vector.broadcast %cst_7 : f32 to vector<8x128xf32>
    %20 = arith.addf %19, %8 : vector<8x128xf32>
    %21 = arith.divf %18, %20 : vector<8x128xf32>
    %22 = arith.mulf %4, %21 : vector<8x128xf32>
    %cst_8 = arith.constant 1.000000e+00 : f32
    %23 = vector.broadcast %cst_8 : f32 to vector<8x128xf32>
    %24 = arith.subf %23, %4 : vector<8x128xf32>
    %cst_9 = arith.constant 1.000000e+00 : f32
    %25 = vector.broadcast %cst_9 : f32 to vector<8x128xf32>
    %26 = arith.subf %25, %21 : vector<8x128xf32>
    %27 = arith.mulf %24, %26 : vector<8x128xf32>
    %28 = arith.addf %22, %27 : vector<8x128xf32>
    %cst_10 = arith.constant 2.500000e-01 : f32
    %29 = vector.broadcast %cst_10 : f32 to vector<8x128xf32>
    %30 = arith.mulf %4, %29 : vector<8x128xf32>
    %cst_11 = arith.constant 1.000000e+00 : f32
    %31 = vector.broadcast %cst_11 : f32 to vector<8x128xf32>
    %32 = arith.subf %31, %4 : vector<8x128xf32>
    %cst_12 = arith.constant 7.500000e-01 : f32
    %33 = vector.broadcast %cst_12 : f32 to vector<8x128xf32>
    %34 = arith.mulf %32, %33 : vector<8x128xf32>
    %35 = arith.addf %30, %34 : vector<8x128xf32>
    %cst_13 = arith.constant 1.000000e+00 : f32
    %36 = vector.broadcast %cst_13 : f32 to vector<8x128xf32>
    %37 = arith.subf %36, %28 : vector<8x128xf32>
    %cst_14 = arith.constant 0.000000e+00 : f32
    %38 = vector.broadcast %cst_14 : f32 to vector<8x128xf32>
    %39 = arith.maximumf %37, %38 : vector<8x128xf32>
    %40 = math.sqrt %39 : vector<8x128xf32>
    %41 = arith.mulf %39, %40 : vector<8x128xf32>
    %c0_15 = arith.constant 0 : index
    %c0_16 = arith.constant 0 : index
    %42 = vector.load %arg5[%c0_15, %c0_16] : memref<8x128xf32, #tpu.memory_space<vmem>>, vector<8x128xf32>
    %43 = arith.mulf %14, %35 : vector<8x128xf32>
    %44 = arith.mulf %43, %41 : vector<8x128xf32>
    %45 = arith.addf %42, %44 : vector<8x128xf32>
    %c0_17 = arith.constant 0 : index
    %c0_18 = arith.constant 0 : index
    %46 = vector.load %arg5[%c0_17, %c0_18] : memref<8x128xf32, #tpu.memory_space<vmem>>, vector<8x128xf32>
    tpu.vector_store %arg5[%c0_17, %c0_18], %45 {strides = array<i32>} : memref<8x128xf32, #tpu.memory_space<vmem>>, vector<8x128xf32>,
    %c0_i32_19 = arith.constant 0 : i32
    %47 = arith.cmpi eq, %arg1, %c0_i32_19 : i32
    %48 = arith.extui %47 : i1 to i32
    %c0_i32_20 = arith.constant 0 : i32
    %49 = arith.cmpi ne, %48, %c0_i32_20 : i32
    scf.if %49 {
      %c0_21 = arith.constant 0 : index
      %c0_22 = arith.constant 0 : index
      %50 = vector.load %arg5[%c0_21, %c0_22] : memref<8x128xf32, #tpu.memory_space<vmem>>, vector<8x128xf32>
      %51 = vector.shape_cast %50 : vector<8x128xf32> to vector<1x8x128xf32>
      %cst_23 = arith.constant dense<0.000000e+00> : vector<1xf32>
      %52 = vector.multi_reduction <add>, %51, %cst_23 [1, 2] : vector<1x8x128xf32> to vector<1xf32>
      %53 = vector.shape_cast %52 : vector<1xf32> to vector<1x1x1xf32>
      %54 = vector.extract %53[0, 0, 0] : f32 from vector<1x1x1xf32>
      %55 = vector.broadcast %54 : f32 to vector<1x1x1xf32>
      %c0_24 = arith.constant 0 : index
      %c0_25 = arith.constant 0 : index
      %c0_26 = arith.constant 0 : index
      %56 = vector.load %arg4[%c0_24, %c0_25, %c0_26] : memref<1x1x1xf32, #tpu.memory_space<vmem>>, vector<1x1x1xf32>
      tpu.vector_store %arg4[%c0_24, %c0_25, %c0_26], %55 {strides = array<i32>} : memref<1x1x1xf32, #tpu.memory_space<vmem>>, vector<1x1x1xf32>,
    } else {
    }
    return
  }
  func.func @transform_0(%arg0: i32, %arg1: i32) -> (i32, i32) {
    %c1_i32 = arith.constant 1 : i32
    %0 = arith.muli %arg0, %c1_i32 : i32
    %1 = arith.addi %0, %arg1 : i32
    %c0_i32 = arith.constant 0 : i32
    %c0_i32_0 = arith.constant 0 : i32
    return %1, %c0_i32 : i32, i32
  }
  func.func @transform_1(%arg0: i32, %arg1: i32) -> (i32, i32) {
    %c1_i32 = arith.constant 1 : i32
    %0 = arith.muli %arg0, %c1_i32 : i32
    %1 = arith.addi %0, %arg1 : i32
    %c0_i32 = arith.constant 0 : i32
    %c0_i32_0 = arith.constant 0 : i32
    return %1, %c0_i32 : i32, i32
  }
  func.func @transform_2(%arg0: i32, %arg1: i32) -> (i32, i32, i32) {
    %c0_i32 = arith.constant 0 : i32
    %c0_i32_0 = arith.constant 0 : i32
    %c0_i32_1 = arith.constant 0 : i32
    return %arg0, %c0_i32, %c0_i32_0 : i32, i32, i32
  }
}

</mosaic_0001>

<bundles_post_ra>
// kernel: tpu_custom_call.1
= control target key start
LH: loop header
LB: loop body
LE: loop exit
PB: predicated region body
PF: predicated region fallthrough
CT: control target
= control target key end

     0   :  { %7 = vsyncpa [#allocation4], 0  ;;  %s705_s0 = inlined_call_operand.hbm [shape: f32[16,128], index: 0, kind: input, shape index: {}]   ;;  %s706_s1 = inlined_call_operand.hbm [shape: f32[16,128], index: 1, kind: input, shape index: {}]   ;;  %s707_s2 = inlined_call_operand.vmem [shape: f32[2,1,1], index: 2, kind: output, shape index: {}]  }
   0x1   :  { %9 = vsyncpa [#allocation4 + $0x1], 0 }
   0x2   :  { %10 = vsyncpa [#allocation6], 0 }
   0x3   :  { %12 = vsyncpa [#allocation6 + $0x1], 0  ;;  %s610_s9 = smov 0   ;;  %s612_s10 = smov 0  }
   0x4   :  { %s614_s11 = smov 0   ;;  %s616_s12 = smov 0  }
   0x5   :  { %s618_s13 = smov 0   ;;  %s620_s14 = smov 0  }
   0x6 LB: > { %s396_s15 = sadd.s32 4294967295, %s593_s14   ;;  %s30_s16 = sadd.s32 1, %s589_s13  ;;  %s593_s14 = sphi %s620_s14, %s18_s14   ;;  %s589_s13 = sphi %s618_s13, %s714_s13   ;;  %s585_s12 = sphi %s616_s12, %s713_s12   ;;  %s581_s11 = sphi %s614_s11, %s712_s11   ;;  %s577_s10 = sphi %s612_s10, %s711_s10   ;;  %s573_s9 = sphi %s610_s9, %s710_s9  }
   0x7   : > { %p32_p0 = scmp.ge.s32.totalorder %s30_s16, 2  ;;  %s39_s17 = sadd.s32 1, %s581_s11 }
   0x8   : > { %p46_p1 = scmp.ne.s32.totalorder %s581_s11, %s577_s10  ;;  %p47_p2 = scmp.eq.s32.totalorder %s593_s14, 0 }
   0x9   : > { %s716_s16 = smov (%p32_p0, %s30_s16), 0  ;;  %p52_p4 = scmp.ne.s32.totalorder %s577_s10, %s573_s9 }
   0xa   : > { %p646_p3 = por %p47_p2, %p46_p1  ;;  %s36_s19 = ssub.s32 %s589_s13, %s716_s16 }
   0xb   : > { %p53_p5 = scmp.eq.s32.totalorder %s396_s15, 0  ;;  %p37_p6 = scmp.eq.s32.totalorder %s36_s19, 0 }
   0xc   : > { %p422_p8 = scmp.lt.s32.totalorder %s593_s14, 2  ;;  %s130_s22 = sand.u32 1, %s581_s11  }
   0xd   : > { %p653_p7 = por %p53_p5, %p52_p4  ;;  %s401_s23 = sshll.u32 %s589_s13, 3 }
   0xe   : > { %s659_s21 = scalar_select %p37_p6, %s581_s11, %s39_s17  }
   0xf   : > { %s400_s24 = sshll.u32 %s130_s22, 3  ;;  %s139_s27 = scalar_lea.hbm %s705_s0, %s401_s23 }
  0x10   : > { %s141_s28 = sshll.u32 %s139_s27, 4  ;;  %s134_s29 = scalar_lea.vmem [#allocation3], %s400_s24  ;;  %s142_s28 = int_to_ptr.hbm [resolvable:$true] %s141_s28 }
  0x11   : > { %s143_s30 = sshll.u32 %s134_s29, 4  ;;  %p416_p9 = pnand %p422_p8, %p646_p3  ;;  %s144_s30 = int_to_ptr.vmem [resolvable:$true] %s143_s30 }
  0x12   : > { %p404_p10 = scmp.ge.s32.totalorder %s593_s14, 1  ;;  %p168_p11 = scmp.lt.s32.totalorder %s593_s14, 3 }
  0x13   : > { %s131_s3 = scalar_lea.sflag [#allocation4], %s130_s22  ;;  %s159_s6 = scalar_lea.hbm %s706_s1, %s401_s23 }
  0x14   : > { %418 = dma.hbm_to_vmem [thread:$0]  (!%p416_p9), %s142_s28, 128, %s144_s30, %s131_s3  }
  0x15   : > { %p169_p12 = pnand %p404_p10, %p168_p11  ;;  %s161_s7 = sshll.u32 %s159_s6, 4  ;;  %s162_s7 = int_to_ptr.hbm [resolvable:$true] %s161_s7 }
  0x16   : > { %s154_s8 = scalar_lea.vmem [#allocation5], %s400_s24  ;;  %s151_s15 = scalar_lea.sflag [#allocation6], %s130_s22 }
  0x17   : > { %s163_s9 = sshll.u32 %s154_s8, 4  ;;  %172 = sbr.rel (%p169_p12) target bundleno = 281 (0x119), region = 28  ;;  %s164_s9 = int_to_ptr.vmem [resolvable:$true] %s163_s9 }
  0x18   : > { %421 = dma.hbm_to_vmem [thread:$0]  (!%p416_p9), %s162_s7, 128, %s164_s9, %s151_s15  }
  0x19   : > { %s174_s17 = sand.u32 (!%p169_p12), 1, %s577_s10  }
  0x1a   : > { %s405_s18 = sshll.u32 (!%p169_p12), %s174_s17, 3  ;;  %s175_s19 = scalar_lea.sflag (!%p169_p12), [#allocation4], %s174_s17 }
  0x1b   : > { %s178_s25 = scalar_lea.vmem (!%p169_p12), [#allocation3], %s405_s18 }
  0x1c   : > { %564 = dma.done.wait (%p653_p7), %s175_s19, 128  }
  0x1d   : > { %566 = vsyncadd (%p653_p7), %s175_s19, 4294967168  ;;  %s185_s23 = scalar_lea.sflag [#allocation6], %s174_s17  ;;  %s188_s24 = scalar_lea.vmem [#allocation5], %s405_s18 }
  0x1e   : > { %568 = dma.done.wait (%p653_p7), %s185_s23, 128  }
  0x1f   : > { %570 = vsyncadd (%p653_p7), %s185_s23, 4294967168  ;;  %v223_v0 = vld [vmem:[%s178_s25] sm:$0xff]  ;;  %v224_v14 = vld [vmem:[%s188_s24] sm:$0xff]  ;;  %p215_p13 = scmp.lt.s32.totalorder %s585_s12, 1  ;;  %vm302_vm8 = vcmask 0  }
  0x20   : > { %v225_v1 = vand.u32 2147483647, %v223_v0  ;;  %vm242_vm2 = vcmp.ge.f32.partialorder %v223_v0, 0.0  ;;  %v261_v19 = vsub.f32 1.0, %v224_v14  ;;  %v229_v31 = vmax.f32 %v223_v0, 0.0 }
  0x21   : > { %v230_v32 = vmul.f32 %v224_v14, %v223_v0  ;;  %v265_v38 = vmul.f32 0.25, %v224_v14  ;;  %s718_s12 = smov (!%p215_p13, %s585_s12), 1 }
  0x22   : > { %v226_v2 = vsub.f32 0.0, %v225_v1  ;;  %v266_v39 = vmul.f32 0.75, %v261_v19  ;;  %s217_s26 = scalar_lea.vmem %s707_s2, %s718_s12 }
  0x23   : > { %v231_v37 = vsub.f32 %v229_v31, %v230_v32 }
  0x24   : > { %v227_v3 = vmul.f32 1.442695, %v226_v2  ;;  %v267_v44 = vadd.f32 %v266_v39, %v265_v38 }
  0x26   : > { %471 = vpow2.f32 %v227_v3 }
  0x2c   : > { %v472_v4 = vpop.eup %471 }
  0x2d   : > { %v232_v5 = vadd.f32 1.0, %v472_v4  ;;  %v243_v15 = vsel %vm242_vm2, 1.0, %v472_v4  ;;  %v235_v26 = vmul.f32 -0.5, %v472_v4  ;;  %v238_v29 = vand.u32 2147483647, %v472_v4 }
  0x2f   : > { %473 = vrcp.f32 %v232_v5  ;;  %v256_v8 = vand.u32 2147483648, %v232_v5  ;;  %vm250_vm0 = vweird.f32 %v232_v5  ;;  %v254_v10 = vand.u32 2147483647, %v232_v5 }
  0x30   : > { %475 = vlog2.f32 %v232_v5  ;;  %v236_v27 = vadd.f32 1.0, %v235_v26  ;;  %vm239_vm5 = vcmp.lt.f32.partialorder %v238_v29, 0.0004427343 }
  0x31   : > { %v257_v12 = vor.u32 1.1754944e-38, %v256_v8  ;;  %vm255_vm4 = vcmp.eq.f32.partialorder %v254_v10, 8.507059e+37 }
  0x32   : > { %v237_v35 = vmul.f32 %v472_v4, %v236_v27 }
  0x35   : > { %v474_v6 = vpop.eup %473 }
  0x36   : > { %v246_v7 = vmul.f32 %v474_v6, %v232_v5  ;;  %vm251_vm1 = vweird.f32 %v474_v6  ;;  %v476_v28 = vpop.eup %475 }
  0x37   : > { %vm252_vm3 = vmor %vm250_vm0, %vm251_vm1  ;;  %v234_v34 = vmul.f32 0.6931472, %v476_v28 }
  0x38   : > { %v247_v9 = vsub.f32 1.0, %v246_v7 }
  0x39   : > { %v240_v41 = vsel %vm239_vm5, %v237_v35, %v234_v34 }
  0x3a   : > { %v248_v11 = vmul.f32 %v474_v6, %v247_v9  ;;  %v241_v43 = vadd.f32 %v240_v41, %v231_v37 }
  0x3c   : > { %v249_v13 = vadd.f32 %v474_v6, %v248_v11  ;;  %v284_v49 = vmul.f32 %v267_v44, %v241_v43 }
  0x3e   : > { %v253_v16 = vsel %vm252_vm3, %v474_v6, %v249_v13 }
  0x3f   : > { %v258_v17 = vsel %vm255_vm4, %v257_v12, %v253_v16 }
  0x40   : > { %v259_v18 = vmul.f32 %v258_v17, %v243_v15 }
  0x42   : > { %v260_v20 = vmul.f32 %v259_v18, %v224_v14  ;;  %v262_v21 = vsub.f32 1.0, %v259_v18 }
  0x44   : > { %v263_v22 = vmul.f32 %v262_v21, %v261_v19 }
  0x46   : > { %v264_v23 = vadd.f32 %v263_v22, %v260_v20 }
  0x48   : > { %v268_v24 = vsub.f32 1.0, %v264_v23 }
  0x4a   : > { %v269_v25 = vmax.f32 %v268_v24, 0.0 }
  0x4c   : > { %477 = vrsqrt.f32 %v269_v25  ;;  %vm277_vm6 = vcmp.eq.f32.partialorder %v269_v25, inf  ;;  %v280_v46 = vand.u32 2147483648, %v269_v25  ;;  %vm279_vm7 = vcmp.eq.f32.partialorder %v269_v25, 0.0 }
  0x52   : > { %v478_v30 = vpop.eup %477 }
  0x53   : > { %v271_v33 = vmul.f32 %v478_v30, %v269_v25 }
  0x55   : > { %v272_v36 = vmul.f32 %v478_v30, %v271_v33 }
  0x57   : > { %v273_v40 = vmul.f32 0.5, %v272_v36 }
  0x59   : > { %v274_v42 = vsub.f32 1.5, %v273_v40 }
  0x5b   : > { %v275_v45 = vmul.f32 %v478_v30, %v274_v42 }
  0x5d   : > { %v276_v47 = vmul.f32 %v275_v45, %v269_v25 }
  0x5f   : > { %v278_v48 = vsel %vm277_vm6, %v269_v25, %v276_v47 }
  0x60   : > { %v281_v50 = vsel %vm279_vm7, %v280_v46, %v278_v48 }
  0x61   : > { %v282_v51 = vmul.f32 %v281_v50, %v269_v25 }
  0x63   : > { %v285_v52 = vmul.f32 %v284_v49, %v282_v51 }
  0x65   : > { %292 = vadd.xlane.f32.xlu0 %v285_v52 }
  0xd8   : > { %v293_v53 = vpop.xlane.xlu0 %292 }
  0xd9   : > { %v294_v54 = vrot.slane %v293_v53, 4 }
  0xdb   : > { %v295_v55 = vadd.f32 %v294_v54, %v293_v53 }
  0xdd   : > { %v296_v56 = vrot.slane %v295_v55, 2 }
  0xdf   : > { %v297_v57 = vadd.f32 %v296_v56, %v295_v55 }
  0xe1   : > { %v298_v58 = vrot.slane %v297_v57, 1 }
  0xe3   : > { %v299_v59 = vadd.f32 %v298_v58, %v297_v57 }
  0xe5   : > { %409 = vpush %v299_v59 }
 0x116   : > { %s410_s27 = spop %409 }
 0x117   : > { %v301_v60 = vstv %s410_s27 }
 0x118   : > { %303 = vst.msk [vmem:[%s217_s26] sm:$0x1] %vm302_vm8, %v301_v60 }
 0x119 PF: > { %s18_s14 = sadd.s32 1, %s593_s14   ;;  %s710_s9 = smov %s577_s10 }
 0x11a   : > { %p15_p0 = scmp.ge.s32.totalorder %s18_s14, 4   ;;  %s711_s10 = smov %s581_s11 }
 0x11b   : > { %s712_s11 = smov %s659_s21  ;;  %s713_s12 = smov %s589_s13 }
 0x11c   : > { %s714_s13 = smov %s716_s16  ;;  %17 = sbr.rel (!%p15_p0) target bundleno = 6 (0x6), region = 89 }
 0x121   :  { %321 = vsyncpa [#allocation4], 1 }
 0x122   :  { %323 = vsyncpa [#allocation4 + $0x1], 1 }
 0x123   :  { %324 = vsyncpa [#allocation6], 1 }
 0x124   :  { %326 = vsyncpa [#allocation6 + $0x1], 1 }

</bundles_post_ra>
